<compile_context>
chip_gen: v6e
topology: v6e:2x2x1
jax: 0.10.0
libtpu: 0.0.40
codegen_flags: <defaults>
</compile_context>

<pallas_src>
import functools

import numpy as np
import jax
import jax.numpy as jnp
from jax import lax
from jax.experimental import pallas as pl
from jax.experimental.pallas import tpu as pltpu

# pywt Wavelet("db3") decomposition filters (hard-coded, deterministic).
_DB3_DEC_LO = np.array(
    [0.035226291882100656, -0.08544127388224149, -0.13501102001039084,
     0.4598775021193313, 0.8068915093133388, 0.3326705529509569],
    dtype=np.float64)
_DB3_DEC_HI = np.array(
    [-0.3326705529509569, 0.8068915093133388, -0.4598775021193313,
     -0.13501102001039084, 0.08544127388224149, 0.035226291882100656],
    dtype=np.float64)
_FILT_LEN = 6

# ptwt flips dec filters (torch conv2d is cross-correlation); cross-correlating
# with flip(dec_*) == convolving with dec_*.
_G_LO = _DB3_DEC_LO[::-1].copy()
_G_HI = _DB3_DEC_HI[::-1].copy()


def _round_up(v, m):
    return -(-v // m) * m


# ---------------------------------------------------------------------------
# Filter-matrix construction (host-side numpy, exact to f32 rounding).
# ---------------------------------------------------------------------------
def _folded_downsample_matrix(filt, n_in):
    """Banded stride-2 conv matrix with edge-replicate padding folded in.

    D_eff (n_out, n_in) such that D_eff @ v equals the stride-2
    cross-correlation of `filt` with the replicate-padded v
    (pad_front = 4, pad_end = 4 + n_in % 2 for db3, as in ptwt._get_pad).
    """
    pad = (2 * _FILT_LEN - 3) // 2                   # 4 for db3
    pad_end = pad + (n_in % 2)
    n_pad = n_in + pad + pad_end
    n_out = (n_pad - _FILT_LEN) // 2 + 1

    d = np.zeros((n_out, n_pad), dtype=np.float64)
    for i in range(n_out):
        d[i, 2 * i:2 * i + _FILT_LEN] = filt
    # Replicate-pad operator P: padded index j reads clip(j - pad, 0, n_in-1).
    p = np.zeros((n_pad, n_in), dtype=np.float64)
    for j in range(n_pad):
        p[j, min(max(j - pad, 0), n_in - 1)] = 1.0
    return d @ p, n_out


def _build_fused_filter_matrices(h, w):
    dlo_h, ho = _folded_downsample_matrix(_G_LO, h)
    dhi_h, _ = _folded_downsample_matrix(_G_HI, h)
    dlo_w, wo = _folded_downsample_matrix(_G_LO, w)
    dhi_w, _ = _folded_downsample_matrix(_G_HI, w)

    two_ho_p = _round_up(2 * ho, 128)
    two_wo_p = _round_up(2 * wo, 128)

    # Height filters, pre-transposed for the M = TB*2Wo height-pass matmul:
    # (H, 2Ho_pad), columns [0,ho)=low-pass, [ho,2ho)=high-pass, rest zeros.
    dr_t = np.zeros((h, two_ho_p), dtype=np.float32)
    dr_t[:, :ho] = dlo_h.T
    dr_t[:, ho:2 * ho] = dhi_h.T

    # Width filters: (W, 2Wo_pad), columns [0,wo)=low-pass, [wo,2wo)=high-pass.
    dc = np.zeros((w, two_wo_p), dtype=np.float32)
    dc[:, :wo] = dlo_w.T
    dc[:, wo:2 * wo] = dhi_w.T
    return dr_t, dc, ho, wo


@functools.lru_cache(maxsize=None)
def _get_filters(h, w):
    """Cache per (h, w): host numpy build + device upload happen once."""
    dr_t_np, dc_np, ho, wo = _build_fused_filter_matrices(h, w)
    return jnp.asarray(dr_t_np), jnp.asarray(dc_np), ho, wo


# ---------------------------------------------------------------------------
# Batch-tile selection (no wrapper-side padding pass, VMEM-budgeted).
# ---------------------------------------------------------------------------
def _pick_tile_batch(b, h, w, two_ho_p, two_wo_p,
                     row_target=512, vmem_budget=40 * 1024 * 1024):
    per_img = 4 * (2 * 2 * h * w                  # x, y blocks, double-buffered
                   + h * w                        # d
                   + 2 * h * two_wo_p             # cols + its transpose
                   + 2 * two_wo_p * two_ho_p)     # full + masked squares
    fixed = 4 * 2 * (h * two_ho_p + w * two_wo_p)   # filter blocks (2 buffers)
    cap = max(1, (vmem_budget - fixed) // per_img)
    cap = min(cap, max(1, row_target // h), b)      # ~512 rows per matmul
    if b >= 2:
        cap = min(cap, b // 2)                      # >= 2 grid steps (v7x: 2 TCs)
    cap = max(1, cap)
    for tb in range(cap, 0, -1):                    # divisor of b -> no jnp.pad
        if b % tb == 0:
            return tb
    return 1


# ---------------------------------------------------------------------------
# Pallas kernel
# ---------------------------------------------------------------------------
def _make_dwt_loss_kernel(ho, wo):
    def kernel(x_ref, y_ref, dc_ref, drt_ref, out_ref):
        tb, h, w = x_ref.shape
        two_wo_p = dc_ref.shape[1]
        two_ho_p = drt_ref.shape[1]

        # Linearity: transform d = x - y once.
        d = x_ref[...] - y_ref[...]                               # (TB,H,W) VPU

        # Width pass: one MXU matmul, M = TB*H, K = W, N = 2Wo_pad (lane-dense).
        cols = jnp.dot(d.reshape(tb * h, w), dc_ref[...],
                       preferred_element_type=jnp.float32)        # (TB*H, 2Wo_p)

        # Height pass: minor-dim transpose (XLU, overlaps MXU), then ONE matmul
        # with M = TB*2Wo_pad against the pre-transposed (H, 2Ho_pad) filter.
        cols_t = jnp.swapaxes(cols.reshape(tb, h, two_wo_p), 1, 2)  # (TB,2Wo_p,H)
        full = jnp.dot(cols_t.reshape(tb * two_wo_p, h), drt_ref[...],
                       preferred_element_type=jnp.float32)        # (TB*2Wo_p,2Ho_p)
        full = full.reshape(tb, two_wo_p, two_ho_p)

        # Detail (LH+HL+HH) sum of squares in a single fused masked VPU pass.
        # Zero-padded filter columns contribute exactly 0, so only the true LL
        # quadrant is masked out (no large-minus-large cancellation).
        w_idx = lax.broadcasted_iota(jnp.int32, full.shape, 1)
        h_idx = lax.broadcasted_iota(jnp.int32, full.shape, 2)
        is_ll = (w_idx < wo) & (h_idx < ho)
        sq = jnp.where(is_ll, 0.0, full * full)

        # Reduce only over sublane axes; write 128 lane-wise partials (the
        # cross-lane reduce finishes in the wrapper, off the critical path).
        lanes = jnp.sum(sq.reshape(tb * two_wo_p, two_ho_p), axis=0)   # (2Ho_p,)
        lanes = jnp.sum(lanes.reshape(two_ho_p // 128, 128), axis=0)   # (128,)
        out_ref[...] = jnp.broadcast_to(lanes.reshape(1, 1, 128), (1, 8, 128))

    return kernel


# ---------------------------------------------------------------------------
# Wrapper
# ---------------------------------------------------------------------------
def discrete_wavelet_loss(x, y, loss_weight=1.0):
    """Pallas-TPU DiscreteWaveletLoss forward (db3, level=1, mode='constant')."""
    n, c, h, w = x.shape
    b = n * c
    dr_t, dc_cat, ho, wo = _get_filters(h, w)
    two_ho_p = dr_t.shape[1]
    two_wo_p = dc_cat.shape[1]

    xf = x.reshape(b, h, w).astype(jnp.float32)
    yf = y.reshape(b, h, w).astype(jnp.float32)

    tb = _pick_tile_batch(b, h, w, two_ho_p, two_wo_p)
    num_tiles = b // tb

    partials = pl.pallas_call(
        _make_dwt_loss_kernel(ho, wo),
        out_shape=jax.ShapeDtypeStruct((num_tiles, 8, 128), jnp.float32),
        grid=(num_tiles,),
        in_specs=[
            pl.BlockSpec((tb, h, w), lambda i: (i, 0, 0)),
            pl.BlockSpec((tb, h, w), lambda i: (i, 0, 0)),
            pl.BlockSpec((w, two_wo_p), lambda i: (0, 0)),    # grid-invariant
            pl.BlockSpec((h, two_ho_p), lambda i: (0, 0)),    # grid-invariant
        ],
        out_specs=pl.BlockSpec((1, 8, 128), lambda i: (i, 0, 0)),
        compiler_params=pltpu.CompilerParams(
            dimension_semantics=("parallel",),
            vmem_limit_bytes=48 * 1024 * 1024),
    )(xf, yf, dc_cat, dr_t)

    total = jnp.sum(partials[:, 0, :])       # finish the lane reduce here
    denom = jnp.float32(b * ho * wo)          # mean over (N,C,Ho,Wo) per subband
    return jnp.float32(loss_weight) * total / denom


# ---------------------------------------------------------------------------
# Pure-JAX reference (original formulation: explicit pad, separate x/y DWTs).
# ---------------------------------------------------------------------------
def _reference_loss(x, y, loss_weight=1.0):
    hi_p = jax.lax.Precision.HIGHEST
    n, c, h, w = x.shape
    b = n * c
    pad = (2 * _FILT_LEN - 3) // 2
    padb = pad + (h % 2)
    padr = pad + (w % 2)
    hp, wp = h + pad + padb, w + pad + padr
    ho = (hp - _FILT_LEN) // 2 + 1
    wo = (wp - _FILT_LEN) // 2 + 1

    xf = x.reshape(b, h, w).astype(jnp.float32)
    yf = y.reshape(b, h, w).astype(jnp.float32)
    xp = jnp.pad(xf, ((0, 0), (pad, padb), (pad, padr)), mode="edge")
    yp = jnp.pad(yf, ((0, 0), (pad, padb), (pad, padr)), mode="edge")

    def dsmat(filt, n_out, n_pad):
        m = np.zeros((n_out, n_pad), dtype=np.float32)
        for i in range(n_out):
            m[i, 2 * i:2 * i + _FILT_LEN] = filt
        return jnp.asarray(m)

    dlo_r, dhi_r = dsmat(_G_LO, ho, hp), dsmat(_G_HI, ho, hp)
    dlo_c, dhi_c = dsmat(_G_LO, wo, wp), dsmat(_G_HI, wo, wp)

    def bands(img):
        rlo = jnp.einsum("oh,bhw->bow", dlo_r, img, precision=hi_p)
        rhi = jnp.einsum("oh,bhw->bow", dhi_r, img, precision=hi_p)
        lh = jnp.einsum("bow,pw->bop", rhi, dlo_c, precision=hi_p)
        hl = jnp.einsum("bow,pw->bop", rlo, dhi_c, precision=hi_p)
        hh = jnp.einsum("bow,pw->bop", rhi, dhi_c, precision=hi_p)
        return lh, hl, hh

    xb, yb = bands(xp), bands(yp)
    loss = sum(jnp.mean(jnp.square(cx - cy)) for cx, cy in zip(xb, yb))
    return jnp.float32(loss_weight) * loss


if __name__ == "__main__":
    key = jax.random.PRNGKey(0)
    kx, ky = jax.random.split(key)

    # Test 1: white-noise inputs (energy spread across all bands).
    x = jax.random.normal(kx, (2, 4, 16, 16), dtype=jnp.float32)
    y = jax.random.normal(ky, (2, 4, 16, 16), dtype=jnp.float32)
    loss = jax.block_until_ready(discrete_wavelet_loss(x, y, loss_weight=1.0))
    ref = jax.block_until_ready(_reference_loss(x, y, loss_weight=1.0))
    np.testing.assert_allclose(np.asarray(loss), np.asarray(ref),
                               rtol=5e-5, atol=1e-6)

    # Test 2: smooth, LL-dominated residual (stresses the cancellation that the
    # masked detail-sum removes; a naive ss_full - ss_ll would lose digits here).
    ii = jnp.arange(16, dtype=jnp.float32)
    gy, gx = jnp.meshgrid(ii, ii, indexing="ij")
    s1 = jnp.sin(2 * jnp.pi * gy / 16.0) * jnp.cos(2 * jnp.pi * gx / 16.0)
    s2 = (jnp.sin(2 * jnp.pi * (gy + 0.4) / 16.0)
          * jnp.cos(2 * jnp.pi * (gx - 0.3) / 16.0))
    scales = (1.0 + jnp.arange(8, dtype=jnp.float32)).reshape(2, 4, 1, 1)
    x2 = scales * s1[None, None]
    y2 = scales * s2[None, None]
    loss2 = jax.block_until_ready(discrete_wavelet_loss(x2, y2, loss_weight=0.5))
    ref2 = jax.block_until_ready(_reference_loss(x2, y2, loss_weight=0.5))
    np.testing.assert_allclose(np.asarray(loss2), np.asarray(ref2),
                               rtol=5e-4, atol=1e-8)

    print("KERNEL_OK")
</pallas_src>

<mosaic_0001>
module attributes {stable_mosaic.version = 11 : i64} {
  func.func @kernel(%arg0: i32, %arg1: memref<4x16x16xf32, #tpu.memory_space<vmem>>, %arg2: memref<4x16x16xf32, #tpu.memory_space<vmem>>, %arg3: memref<16x128xf32, #tpu.memory_space<vmem>>, %arg4: memref<16x128xf32, #tpu.memory_space<vmem>>, %arg5: memref<1x8x128xf32, #tpu.memory_space<vmem>>) attributes {dimension_semantics = [#tpu.dimension_semantics<parallel>], iteration_bounds = array<i64: 2>, scalar_prefetch = 0 : i64, scratch_operands = 0 : i64, tpu.core_type = #tpu.core_type<tc>, window_params = [{transform_indices = @transform_0, window_bounds = array<i64: 4, 16, 16>}, {transform_indices = @transform_1, window_bounds = array<i64: 4, 16, 16>}, {pipeline_mode = #tpu.pipeline_mode<synchronous>, transform_indices = @transform_2, window_bounds = array<i64: 16, 128>}, {pipeline_mode = #tpu.pipeline_mode<synchronous>, transform_indices = @transform_3, window_bounds = array<i64: 16, 128>}, {transform_indices = @transform_4, window_bounds = array<i64: 1, 8, 128>}]} {
    %c0 = arith.constant 0 : index
    %c0_0 = arith.constant 0 : index
    %c0_1 = arith.constant 0 : index
    %0 = vector.load %arg1[%c0, %c0_0, %c0_1] : memref<4x16x16xf32, #tpu.memory_space<vmem>>, vector<4x16x16xf32>
    %c0_2 = arith.constant 0 : index
    %c0_3 = arith.constant 0 : index
    %c0_4 = arith.constant 0 : index
    %1 = vector.load %arg2[%c0_2, %c0_3, %c0_4] : memref<4x16x16xf32, #tpu.memory_space<vmem>>, vector<4x16x16xf32>
    %2 = arith.subf %0, %1 : vector<4x16x16xf32>
    %3 = vector.shape_cast %2 : vector<4x16x16xf32> to vector<64x16xf32>
    %c0_5 = arith.constant 0 : index
    %c0_6 = arith.constant 0 : index
    %4 = vector.load %arg3[%c0_5, %c0_6] : memref<16x128xf32, #tpu.memory_space<vmem>>, vector<16x128xf32>
    %cst = arith.constant dense<0.000000e+00> : vector<64x128xf32>
    %5 = tpu.matmul %3, %4, %cst {dimension_numbers = #tpu.dot_dimension_numbers<[1], [0], [0], [1], [0, 0, 1, 1], [], []>} : vector<64x16xf32>, vector<16x128xf32>, vector<64x128xf32> -> vector<64x128xf32>
    %6 = vector.shape_cast %5 : vector<64x128xf32> to vector<4x16x128xf32>
    %7 = tpu.transpose %6, [0, 2, 1] : vector<4x16x128xf32> -> vector<4x128x16xf32>
    %8 = vector.shape_cast %7 : vector<4x128x16xf32> to vector<512x16xf32>
    %c0_7 = arith.constant 0 : index
    %c0_8 = arith.constant 0 : index
    %9 = vector.load %arg4[%c0_7, %c0_8] : memref<16x128xf32, #tpu.memory_space<vmem>>, vector<16x128xf32>
    %cst_9 = arith.constant dense<0.000000e+00> : vector<512x128xf32>
    %10 = tpu.matmul %8, %9, %cst_9 {dimension_numbers = #tpu.dot_dimension_numbers<[1], [0], [0], [1], [0, 0, 1, 1], [], []>} : vector<512x16xf32>, vector<16x128xf32>, vector<512x128xf32> -> vector<512x128xf32>
    %11 = vector.shape_cast %10 : vector<512x128xf32> to vector<4x128x128xf32>
    %12 = tpu.iota {dimensions = array<i32: 1>} : vector<4x128x128xi32>
    %13 = tpu.iota {dimensions = array<i32: 2>} : vector<4x128x128xi32>
    %c10_i32 = arith.constant 10 : i32
    %14 = vector.broadcast %c10_i32 : i32 to vector<4x128x128xi32>
    %15 = arith.cmpi slt, %12, %14 : vector<4x128x128xi32>
    %c10_i32_10 = arith.constant 10 : i32
    %16 = vector.broadcast %c10_i32_10 : i32 to vector<4x128x128xi32>
    %17 = arith.cmpi slt, %13, %16 : vector<4x128x128xi32>
    %18 = arith.andi %15, %17 : vector<4x128x128xi1>
    %19 = arith.mulf %11, %11 : vector<4x128x128xf32>
    %cst_11 = arith.constant 0.000000e+00 : f32
    %20 = vector.broadcast %cst_11 : f32 to vector<4x128x128xf32>
    %21 = arith.select %18, %20, %19 : vector<4x128x128xi1>, vector<4x128x128xf32>
    %22 = vector.shape_cast %21 : vector<4x128x128xf32> to vector<512x128xf32>
    %cst_12 = arith.constant dense<0.000000e+00> : vector<128xf32>
    %23 = vector.multi_reduction <add>, %22, %cst_12 [0] : vector<512x128xf32> to vector<128xf32>
    %24 = vector.shape_cast %23 : vector<128xf32> to vector<1x128xf32>
    %cst_13 = arith.constant dense<0.000000e+00> : vector<128xf32>
    %25 = vector.multi_reduction <add>, %24, %cst_13 [0] : vector<1x128xf32> to vector<128xf32>
    %26 = vector.shape_cast %25 : vector<128xf32> to vector<1x1x128xf32>
    %27 = vector.shape_cast %26 : vector<1x1x128xf32> to vector<1x1x128xf32>
    %28 = vector.broadcast %27 : vector<1x1x128xf32> to vector<1x8x128xf32>
    %c0_14 = arith.constant 0 : index
    %c0_15 = arith.constant 0 : index
    %c0_16 = arith.constant 0 : index
    %29 = vector.load %arg5[%c0_14, %c0_15, %c0_16] : memref<1x8x128xf32, #tpu.memory_space<vmem>>, vector<1x8x128xf32>
    tpu.vector_store %arg5[%c0_14, %c0_15, %c0_16], %28 {strides = array<i32>} : memref<1x8x128xf32, #tpu.memory_space<vmem>>, vector<1x8x128xf32>,
    return
  }
  func.func @transform_0(%arg0: i32) -> (i32, i32, i32) {
    %c0_i32 = arith.constant 0 : i32
    %c0_i32_0 = arith.constant 0 : i32
    %c0_i32_1 = arith.constant 0 : i32
    return %arg0, %c0_i32, %c0_i32_0 : i32, i32, i32
  }
  func.func @transform_1(%arg0: i32) -> (i32, i32, i32) {
    %c0_i32 = arith.constant 0 : i32
    %c0_i32_0 = arith.constant 0 : i32
    %c0_i32_1 = arith.constant 0 : i32
    return %arg0, %c0_i32, %c0_i32_0 : i32, i32, i32
  }
  func.func @transform_2(%arg0: i32) -> (i32, i32) {
    %c0_i32 = arith.constant 0 : i32
    %c0_i32_0 = arith.constant 0 : i32
    %c0_i32_1 = arith.constant 0 : i32
    return %c0_i32, %c0_i32_0 : i32, i32
  }
  func.func @transform_3(%arg0: i32) -> (i32, i32) {
    %c0_i32 = arith.constant 0 : i32
    %c0_i32_0 = arith.constant 0 : i32
    %c0_i32_1 = arith.constant 0 : i32
    return %c0_i32, %c0_i32_0 : i32, i32
  }
  func.func @transform_4(%arg0: i32) -> (i32, i32, i32) {
    %c0_i32 = arith.constant 0 : i32
    %c0_i32_0 = arith.constant 0 : i32
    %c0_i32_1 = arith.constant 0 : i32
    return %arg0, %c0_i32, %c0_i32_0 : i32, i32, i32
  }
}

</mosaic_0001>

<bundles_post_ra>
// kernel: tpu_custom_call.1
= control target key start
LH: loop header
LB: loop body
LE: loop exit
PB: predicated region body
PF: predicated region fallthrough
CT: control target
= control target key end

     0   :  { %s2469_s0 = inlined_call_operand.hbm [shape: f32[8,16,16], index: 0, kind: input, shape index: {}]   ;;  %s2470_s1 = inlined_call_operand.hbm [shape: f32[8,16,16], index: 1, kind: input, shape index: {}]   ;;  %s2471_s2 = inlined_call_operand.hbm [shape: f32[16,128], index: 2, kind: input, shape index: {}]   ;;  %s2472_s3 = inlined_call_operand.hbm [shape: f32[16,128], index: 3, kind: input, shape index: {}]   ;;  %s2473_s4 = inlined_call_operand.hbm [shape: f32[2,8,128], index: 4, kind: output, shape index: {}]  }
   0x1   :  { %2481 = sst [smem:[#allocation16_spill]] %s2469_s0 }
   0x2   :  { %9 = vsyncpa [#allocation3], 0 }
   0x3   :  { %11 = vsyncpa [#allocation3 + $0x1], 0 }
   0x4   :  { %12 = vsyncpa [#allocation6], 0 }
   0x5   :  { %14 = vsyncpa [#allocation6 + $0x1], 0 }
   0x6   :  { %15 = vsyncpa [#allocation9], 0 }
   0x7   :  { %16 = vsyncpa [#allocation4], 0 }
   0x8   :  { %18 = vsyncpa [#allocation4 + $0x1], 0  ;;  %s2117_s15 = smov 0   ;;  %s2119_s16 = smov 0  }
   0x9   :  { %s2121_s17 = smov 0   ;;  %s2123_s18 = smov 0  }
   0xa LB: > { %s2138_s19 = sadd.s32 4294967295, %s2083_s18   ;;  %s1529_s20 = sadd.s32 4294967294, %s2083_s18   ;;  %s2083_s18 = sphi %s2123_s18, %s2504_s18   ;;  %s2079_s17 = sphi %s2121_s17, %s2503_s17   ;;  %s2075_s16 = sphi %s2119_s16, %s2502_s16   ;;  %s2071_s15 = sphi %s2117_s15, %s2501_s15  }
   0xb   : > { %p44_p0 = scmp.ne.s32.totalorder %s2075_s16, %s2071_s15  ;;  %p2478_p1 = scmp.eq.s32.totalorder %s2138_s19, 0 }
   0xc   : > { %p136_p2 = scmp.eq.s32.totalorder %s2138_s19, 1  ;;  %p142_p3 = scmp.eq.s32.totalorder %s1529_s20, 1 }
   0xd   : > { %p2147_p4 = por %p2478_p1, %p44_p0  ;;  %p1530_p5 = scmp.ge.s32.totalorder %s2083_s18, 1 }
   0xe   : > { %p2152_p6 = por %p142_p3, %p44_p0  ;;  %p149_p7 = scmp.lt.s32.totalorder %s2083_s18, 3 }
   0xf   : > { %s2482_s21 = scalar_select %p2147_p4, 1, 0 }
  0x10   : > { %s2483_s22 = scalar_select %p2152_p6, 1, 0 }
  0x11   : > { %p2157_p8 = pnand %p1530_p5, %p149_p7  ;;  %s2085_s24 = smov [#allocation7]  }
  0x12   : > { %s161_s25 = sshll.u32 %s2085_s24, 4  ;;  %s2086_s27 = smov [#allocation8]   ;;  %s162_s25 = int_to_ptr.vmem [resolvable:$true] %s161_s25 }
  0x13   : > { %p1838_p9 = pneg %p2157_p8  ;;  %s174_s28 = sshll.u32 %s2086_s27, 4  ;;  %s175_s28 = int_to_ptr.vmem [resolvable:$true] %s174_s28 }
  0x14   : > { %s1910_s29 = scalar_lea.vmem %s162_s25, 256  ;;  %p1918_p5 = scmp.lt.s32.totalorder %s162_s25, %s162_s25 }
  0x15   : > { %p2166_p11 = pnand %p1838_p9, %p2478_p1  ;;  %p1911_p13 = scmp.ne.s32.totalorder %s162_s25, %s1910_s29 }
  0x16   : > { %p1919_p7 = scmp.lt.s32.totalorder %s1910_s29, %s1910_s29 }
  0x17   : > { %p1901_p12 = pneg %p2166_p11 }
  0x18   : > { %p1920_p10 = por %p1919_p7, %p1918_p5 }
  0x19   : > { %p1913_p0 = pnand %p1911_p13, %p1901_p12 }
  0x1b   : > { %p1914_p3 = pneg %p1913_p0 }
  0x1d   : > { %p1921_p9 = pnand %p1920_p10, %p1914_p3 }
  0x1f   : > { %1924 = shalt.err (!%p1921_p9)
}
  0x20   : > { %s2474_s30 = smov 128   ;;  %s2476_s5 = smov 8  }
  0x21   : > { %1841 = dma.hbm_to_vmem [thread:$0]  (!%p2166_p11), %s2471_s2, 256, %s162_s25, [#allocation6], %s2474_s30, %s2474_s30, %s2476_s5  }
  0x22   : > { %s1936_s8 = scalar_lea.vmem %s175_s28, 256  ;;  %p1944_p10 = scmp.lt.s32.totalorder %s175_s28, %s175_s28 }
  0x23   : > { %p1937_p13 = scmp.ne.s32.totalorder %s175_s28, %s1936_s8  ;;  %p1945_p3 = scmp.lt.s32.totalorder %s1936_s8, %s1936_s8 }
  0x25   : > { %p1939_p0 = pnand %p1937_p13, %p1901_p12  ;;  %p1946_p7 = por %p1945_p3, %p1944_p10 }
  0x27   : > { %p1940_p5 = pneg %p1939_p0 }
  0x29   : > { %p1947_p9 = pnand %p1946_p7, %p1940_p5 }
  0x2b   : > { %1950 = shalt.err (!%p1947_p9)
}
  0x2c   : > { %1844 = dma.hbm_to_vmem [thread:$0]  (!%p2166_p11), %s2472_s3, 256, %s175_s28, [#allocation9], %s2474_s30, %s2474_s30, %s2476_s5  }
  0x2d   : > { %s2195_s11 = sadd.s32 1, %s2083_s18   ;;  %s31_s12 = sadd.s32 1, %s2079_s17 }
  0x2e   : > { %s28_s13 = ssub.s32 %s2083_s18, %s2195_s11  ;;  %p38_p12 = scmp.ne.s32.totalorder %s2079_s17, %s2075_s16 }
  0x2f   : > { %p29_p13 = scmp.eq.s32.totalorder %s28_s13, 0  ;;  %p39_p0 = scmp.eq.s32.totalorder %s2083_s18, 0 }
  0x30   : > { %p2205_p5 = por %p136_p2, %p38_p12  ;;  %p1858_p10 = scmp.lt.s32.totalorder %s2083_s18, 2 }
  0x31   : > { %s2211_s20 = scalar_select %p29_p13, %s2079_s17, %s31_s12  }
  0x32   : > { %s2486_s14 = scalar_select %p2205_p5, 1, 0 }
  0x33   : > { %p40_p3 = por %p39_p0, %p38_p12  ;;  %s188_s24 = sand.u32 1, %s2079_s17  }
  0x34   : > { %s1534_s25 = sshll.u32 %s188_s24, 6  ;;  %s1625_s26 = sshll.u32 %s2083_s18, 10 }
  0x35   : > { %s2487_s0 = sld [smem:[#allocation16_spill]]  ;;  %s192_s6 = scalar_lea.vmem [#allocation2], %s1534_s25 }
  0x36   : > { %s200_s7 = sshll.u32 %s192_s6, 4  ;;  %p2222_p2 = pnand %p1858_p10, %p40_p3  ;;  %s2220_s7 = int_to_ptr.vmem [resolvable:$true] %s200_s7 }
  0x37   : > { %s2229_s12 = scalar_lea.hbm %s2470_s1, %s1625_s26  ;;  %s214_s13 = scalar_lea.vmem [#allocation5], %s1534_s25 }
  0x38   : > { %s2231_s27 = sshll.u32 %s214_s13, 4  ;;  %s2233_s28 = scalar_lea.sflag [#allocation3], %s188_s24  ;;  %s2264_s27 = int_to_ptr.vmem [resolvable:$true] %s2231_s27 }
  0x39   : > { %p1953_p7 = pneg %p2222_p2 }
  0x3b   : > { %s2218_s29 = scalar_lea.hbm %s2487_s0, %s1625_s26  ;;  %s1956_s9 = scalar_lea.hbm %s2487_s0, 2048 }
  0x3c   : > { %s1951_s30 = scalar_lea.hbm %s2218_s29, 1024  ;;  %p1957_p13 = scmp.lt.s32.totalorder %s2218_s29, %s2487_s0 }
  0x3d   : > { %p1952_p11 = scmp.ne.s32.totalorder %s2218_s29, %s1951_s30  ;;  %p1958_p0 = scmp.lt.s32.totalorder %s1956_s9, %s1951_s30 }
  0x3f   : > { %p1954_p9 = pnand %p1953_p7, %p1952_p11  ;;  %p1959_p10 = por %p1958_p0, %p1957_p13 }
  0x41   : > { %p1955_p12 = pneg %p1954_p9 }
  0x43   : > { %p1960_p3 = pnand %p1959_p10, %p1955_p12 }
  0x45   : > { %1963 = shalt.err (!%p1960_p3)
}
  0x46   : > { %s1964_s24 = scalar_lea.vmem %s2220_s7, 1024  ;;  %s2089_s5 = smov [#allocation2]  }
  0x47   : > { %p1965_p1 = scmp.ne.s32.totalorder %s2220_s7, %s1964_s24  ;;  %s1969_s25 = sshll.u32 %s2089_s5, 4  ;;  %s1970_s25 = int_to_ptr.vmem [resolvable:$false] %s1969_s25 }
  0x48   : > { %s1971_s13 = scalar_lea.vmem %s1970_s25, 2048  ;;  %p1972_p6 = scmp.lt.s32.totalorder %s2220_s7, %s1970_s25 }
  0x49   : > { %p1967_p11 = pnand %p1965_p1, %p1953_p7  ;;  %p1973_p5 = scmp.lt.s32.totalorder %s1971_s13, %s1964_s24 }
  0x4b   : > { %p1968_p9 = pneg %p1967_p11  ;;  %p1974_p4 = por %p1973_p5, %p1972_p6 }
  0x4d   : > { %p1975_p13 = pnand %p1974_p4, %p1968_p9 }
  0x4f   : > { %1978 = shalt.err (!%p1975_p13)
}
  0x50   : > { %s2489_s30 = smov 8   ;;  %s2490_s6 = smov 128  }
  0x51   : > { %1848 = dma.hbm_to_vmem [thread:$0]  (!%p2222_p2), %s2218_s29, 1024, %s2220_s7, %s2233_s28, %s2490_s6, %s2490_s6, %s2489_s30  }
  0x52   : > { %s210_s9 = sand.u32 1, %s2083_s18   ;;  %s1979_s26 = scalar_lea.hbm %s2229_s12, 1024 }
  0x53   : > { %s211_s10 = scalar_lea.sflag [#allocation6], %s210_s9  ;;  %p1980_p1 = scmp.ne.s32.totalorder %s2229_s12, %s1979_s26 }
  0x54   : > { %s1984_s25 = scalar_lea.hbm %s2470_s1, 2048  ;;  %p1985_p5 = scmp.lt.s32.totalorder %s2229_s12, %s2470_s1 }
  0x55   : > { %p1982_p4 = pnand %p1980_p1, %p1953_p7  ;;  %p1986_p12 = scmp.lt.s32.totalorder %s1984_s25, %s1979_s26 }
  0x57   : > { %p1983_p6 = pneg %p1982_p4  ;;  %p1987_p0 = por %p1986_p12, %p1985_p5 }
  0x59   : > { %p1988_p10 = pnand %p1987_p0, %p1983_p6 }
  0x5b   : > { %1991 = shalt.err (!%p1988_p10)
}
  0x5c   : > { %s1992_s29 = scalar_lea.vmem %s2264_s27, 1024  ;;  %s2090_s7 = smov [#allocation5]  }
  0x5d   : > { %p1993_p3 = scmp.ne.s32.totalorder %s2264_s27, %s1992_s29  ;;  %s1997_s28 = sshll.u32 %s2090_s7, 4  ;;  %s1998_s28 = int_to_ptr.vmem [resolvable:$false] %s1997_s28 }
  0x5e   : > { %s1999_s9 = scalar_lea.vmem %s1998_s28, 2048  ;;  %p2000_p13 = scmp.lt.s32.totalorder %s2264_s27, %s1998_s28 }
  0x5f   : > { %p1995_p11 = pnand %p1993_p3, %p1953_p7  ;;  %p2001_p1 = scmp.lt.s32.totalorder %s1999_s9, %s1992_s29 }
  0x61   : > { %p1996_p9 = pneg %p1995_p11  ;;  %p2002_p4 = por %p2001_p1, %p2000_p13 }
  0x63   : > { %p2003_p5 = pnand %p2002_p4, %p1996_p9 }
  0x65   : > { %2006 = shalt.err (!%p2003_p5)
}
  0x66   : > { %1851 = dma.hbm_to_vmem [thread:$0]  (!%p2222_p2), %s2229_s12, 1024, %s2264_s27, %s211_s10, %s2490_s6, %s2490_s6, %s2489_s30  }
  0x67   : > { %234 = sbr.rel (%p2157_p8) target bundleno = 828 (0x33c), region = 36  ;;  %s2295_s0 = sand.u32 (!%p2157_p8), 1, %s2075_s16  }
  0x68   : > { %s1543_s26 = sshll.u32 (!%p2157_p8), %s2295_s0, 6  ;;  %s237_s24 = scalar_lea.sflag (!%p2157_p8), [#allocation3], %s2295_s0 }
  0x69   : > { %s2299_s5 = scalar_lea.vmem (!%p2157_p8), [#allocation2], %s1543_s26  ;;  %p2491_p7 = scmp.ne.s32.totalorder (!%p2157_p8), %s2482_s21, 0 }
  0x6c   : > { %2050 = dma.done.wait (%p2491_p7), %s237_s24, 1024  }
  0x6d   : > { %2052 = vsyncadd (%p2491_p7), %s237_s24, 4294966272  ;;  %s245_s8 = sand.u32 1, %s2138_s19   ;;  %s2306_s12 = scalar_lea.vmem [#allocation5], %s1543_s26 }
  0x6e   : > { %s246_s23 = scalar_lea.sflag [#allocation6], %s245_s8 }
  0x6f   : > { %2054 = dma.done.wait (%p2491_p7), %s246_s23, 1024  }
  0x70   : > { %2056 = vsyncadd (%p2491_p7), %s246_s23, 4294966272  ;;  %p2492_p8 = scmp.eq.s32.totalorder %s2138_s19, 0 }
  0x72   : > { %2058 = dma.done.wait (%p2492_p8), [#allocation6], 256   ;;  %p2493_p2 = pmov %p2492_p8 }
  0x74   : > { %2060 = vsyncadd (%p2493_p2), [#allocation6], 4294967040  ;;  %p2494_p6 = pmov %p2493_p2 }
  0x75   : > { %p2495_p12 = pmov %p2493_p2 }
  0x76   : > { %2062 = dma.done.wait (%p2494_p6), [#allocation9], 256  }
  0x77   : > { %2064 = vsyncadd (%p2495_p12), [#allocation9], 4294967040  ;;  %v314_v0 = vld [vmem:[#allocation7 + $0x8] sm:$0xff]  ;;  %v313_v1 = vld [vmem:[#allocation7] sm:$0xff]  ;;  %vm315_vm0 = vcmask 130048   ;;  %s1547_s21 = sshll.u32 %s2295_s0, 3 }
  0x78   : > { %v289_v2 = vld [vmem:[%s2299_s5] sm:$0xff]  ;;  %1704 = vmatprep.subr.mxu0 %v314_v0  ;;  %v290_v4 = vld [vmem:[%s2299_s5 + $0x8] sm:$0xff]  ;;  %v291_v8 = vld [vmem:[%s2299_s5 + $0x10] sm:$0xff]  ;;  %s1621_s27 = sshll.u32 %s2138_s19, 7  ;;  %s286_s30 = scalar_lea.vmem [#allocation10], %s1547_s21 }
  0x79   : > { %v297_v3 = vld [vmem:[%s2306_s12] sm:$0xff]  ;;  %v298_v5 = vld [vmem:[%s2306_s12 + $0x8] sm:$0xff]  ;;  %1705 = vmatpush3.msra.mxu0 %v314_v0  ;;  %v299_v9 = vld [vmem:[%s2306_s12 + $0x10] sm:$0xff]  ;;  %s1417_s6 = sshll.u32 %s286_s30, 4  ;;  %s1415_s13 = scalar_lea.hbm %s2473_s4, %s1621_s27  ;;  %s1418_s6 = int_to_ptr.vmem [resolvable:$true] %s1417_s6 }
  0x7a   : > { %v305_v6 = vsub.f32 %v289_v2, %v297_v3  ;;  %v306_v7 = vsub.f32 %v290_v4, %v298_v5  ;;  %v292_v10 = vld [vmem:[%s2299_s5 + $0x18] sm:$0xff]  ;;  %1706 = vmatprep.subr.mxu0 %v313_v1  ;;  %v307_v11 = vsub.f32 %v291_v8, %v299_v9  ;;  %v293_v13 = vld [vmem:[%s2299_s5 + $0x20] sm:$0xff]  ;;  %v294_v17 = vld [vmem:[%s2299_s5 + $0x28] sm:$0xff]  ;;  %s1404_s29 = scalar_lea.sflag [#allocation4], %s2295_s0  ;;  %s2007_s7 = scalar_lea.vmem %s1418_s6, 128 }
  0x7b   : > { %v300_v12 = vld [vmem:[%s2306_s12 + $0x18] sm:$0xff]  ;;  %v301_v14 = vld [vmem:[%s2306_s12 + $0x20] sm:$0xff]  ;;  %1707 = vmatpush3.msra.mxu0 %v313_v1  ;;  %v302_v18 = vld [vmem:[%s2306_s12 + $0x28] sm:$0xff]  ;;  %p2008_p0 = scmp.ne.s32.totalorder %s1418_s6, %s2007_s7  ;;  %p2498_p10 = scmp.ne.s32.totalorder %s2486_s14, 0 }
  0x7c   : > { %1708 = vmatprep.mubr.msk.f32.mxu0 %vm315_vm0, %v305_v6  ;;  %v308_v15 = vsub.f32 %v292_v10, %v300_v12  ;;  %v309_v16 = vsub.f32 %v293_v13, %v301_v14  ;;  %v295_v19 = vld [vmem:[%s2299_s5 + $0x30] sm:$0xff]  ;;  %v310_v21 = vsub.f32 %v294_v17, %v302_v18  ;;  %v296_v23 = vld [vmem:[%s2299_s5 + $0x38] sm:$0xff]  ;;  %s2091_s28 = smov [#allocation10]  }
  0x7d   : > { %1709 = vmatmul.mubr.msk.f32.vlgmr.msra.gmra.mxu0 %vm315_vm0, %v306_v7  ;;  %v303_v20 = vld [vmem:[%s2306_s12 + $0x30] sm:$0xff]  ;;  %v304_v24 = vld [vmem:[%s2306_s12 + $0x38] sm:$0xff]  ;;  %p2009_p3 = pnand %p2008_p0, %p2498_p10  ;;  %s2011_s9 = sshll.u32 %s2091_s28, 4  ;;  %s2012_s9 = int_to_ptr.vmem [resolvable:$false] %s2011_s9 }
  0x7e   : > { %1711 = vmatprep.mubr.msk.f32.mxu0 %vm315_vm0, %v307_v11  ;;  %v311_v22 = vsub.f32 %v295_v19, %v303_v20  ;;  %v312_v25 = vsub.f32 %v296_v23, %v304_v24  ;;  %v574_v26 = vld [vmem:[#allocation8 + $0x8] sm:$0xff]  ;;  %v573_v28 = vld [vmem:[#allocation8] sm:$0xff]  ;;  %s2013_s19 = scalar_lea.vmem %s2012_s9, 256  ;;  %p2014_p9 = scmp.lt.s32.totalorder %s1418_s6, %s2012_s9 }
  0x7f   : > { %1720 = vmatprep.subr.mxu0 %v574_v26  ;;  %1820 = vmatprep.subr.mxu1 %v574_v26  ;;  %p2010_p11 = pneg %p2009_p3  ;;  %p2015_p13 = scmp.lt.s32.totalorder %s2013_s19, %s2007_s7 }
  0x80   : > { %1721 = vmatpush3.msra.mxu0 %v574_v26  ;;  %1822 = vmatpush3.msra.mxu1 %v574_v26 }
  0x81   : > { %1712 = vmatmul.mubr.msk.f32.gmra.mxu0 %vm315_vm0, %v308_v15  ;;  %1722 = vmatprep.subr.mxu0 %v573_v28  ;;  %p2016_p1 = por %p2015_p13, %p2014_p9 }
  0x82   : > { %1714 = vmatprep.mubr.msk.f32.mxu0 %vm315_vm0, %v309_v16  ;;  %1821 = vmatprep.subr.mxu1 %v573_v28 }
  0x83   : > { %1723 = vmatpush3.msra.mxu0 %v573_v28  ;;  %1823 = vmatpush3.msra.mxu1 %v573_v28  ;;  %p2017_p4 = pnand %p2016_p1, %p2010_p11 }
  0x85   : > { %1715 = vmatmul.mubr.msk.f32.gmra.mxu0 %vm315_vm0, %v310_v21 }
  0x86   : > { %1717 = vmatprep.mubr.msk.f32.mxu0 %vm315_vm0, %v311_v22 }
  0x89   : > { %1718 = vmatmul.mubr.msk.f32.gmra.mxu0 %vm315_vm0, %v312_v25 }
 0x13d   : > { %v1710_v27 = vpop.f32.mrf.mxu0 }
 0x13f   : > { %v406_v29 = vpop.f32.mrf.mxu0 }
 0x140   : > { %445 = vxpose.xlu0.b32.start [1/2] (short) %v406_v29, 128 }
 0x141   : > { %v1713_v30 = vpop.f32.mrf.mxu0 }
 0x143   : > { %v416_v31 = vpop.f32.mrf.mxu0 }
 0x144   : > { %446 = vxpose.xlu0.b32.end [2/2] (short) %v1710_v27, 128  ;;  %477 = vxpose.xlu1.b32.start [1/2] (short) %v416_v31, 128 }
 0x145   : > { %v1716_v32 = vpop.f32.mrf.mxu0 }
 0x147   : > { %v426_v33 = vpop.f32.mrf.mxu0 }
 0x148   : > { %478 = vxpose.xlu1.b32.end [2/2] (short) %v1713_v30, 128 }
 0x149   : > { %v1719_v34 = vpop.f32.mrf.mxu0 }
 0x14b   : > { %v436_v35 = vpop.f32.mrf.mxu0 }
 0x17d   : > { %509 = vxpose.xlu0.b32.start [1/2] (short) %v426_v33, 128 }
 0x181   : > { %510 = vxpose.xlu0.b32.end [2/2] (short) %v1716_v32, 128  ;;  %541 = vxpose.xlu1.b32.start [1/2] (short) %v436_v35, 128 }
 0x185   : > { %542 = vxpose.xlu1.b32.end [2/2] (short) %v1719_v34, 128 }
 0x1bc   : > { %v461_v36 = vpop.trf.xlu0 }
 0x1bd   : > { %1724 = vmatprep.mubr.msk.f32.mxu0 %vm315_vm0, %v461_v36  ;;  %v1152_v36 = vlaneseq }
 0x1c0   : > { %v462_v37 = vpop.trf.xlu0  ;;  %v493_v38 = vpop.trf.xlu1 }
 0x1c1   : > { %1725 = vmatmul.mubr.msk.f32.vlgmr.msra.gmra.mxu0 %vm315_vm0, %v462_v37 }
 0x1c4   : > { %v463_v39 = vpop.trf.xlu0  ;;  %v494_v40 = vpop.trf.xlu1 }
 0x1c5   : > { %1727 = vmatprep.mubr.msk.f32.mxu0 %vm315_vm0, %v463_v39 }
 0x1c8   : > { %v464_v41 = vpop.trf.xlu0  ;;  %v495_v42 = vpop.trf.xlu1 }
 0x1c9   : > { %1728 = vmatmul.mubr.msk.f32.gmra.mxu0 %vm315_vm0, %v464_v41 }
 0x1cc   : > { %v465_v43 = vpop.trf.xlu0  ;;  %v496_v44 = vpop.trf.xlu1 }
 0x1cd   : > { %1730 = vmatprep.mubr.msk.f32.mxu0 %vm315_vm0, %v465_v43 }
 0x1d0   : > { %v466_v45 = vpop.trf.xlu0  ;;  %v497_v46 = vpop.trf.xlu1 }
 0x1d1   : > { %1731 = vmatmul.mubr.msk.f32.gmra.mxu0 %vm315_vm0, %v466_v45 }
 0x1d4   : > { %v467_v47 = vpop.trf.xlu0  ;;  %v498_v48 = vpop.trf.xlu1 }
 0x1d5   : > { %1733 = vmatprep.mubr.msk.f32.mxu0 %vm315_vm0, %v467_v47 }
 0x1d8   : > { %v468_v49 = vpop.trf.xlu0  ;;  %v499_v50 = vpop.trf.xlu1 }
 0x1d9   : > { %1734 = vmatmul.mubr.msk.f32.gmra.mxu0 %vm315_vm0, %v468_v49 }
 0x1dc   : > { %v469_v51 = vpop.trf.xlu0  ;;  %v500_v52 = vpop.trf.xlu1 }
 0x1dd   : > { %1736 = vmatprep.mubr.msk.f32.mxu0 %vm315_vm0, %v469_v51 }
 0x1e0   : > { %v470_v53 = vpop.trf.xlu0  ;;  %v501_v54 = vpop.trf.xlu1 }
 0x1e1   : > { %1737 = vmatmul.mubr.msk.f32.gmra.mxu0 %vm315_vm0, %v470_v53 }
 0x1e4   : > { %v471_v55 = vpop.trf.xlu0  ;;  %v502_v56 = vpop.trf.xlu1 }
 0x1e5   : > { %1739 = vmatprep.mubr.msk.f32.mxu0 %vm315_vm0, %v471_v55 }
 0x1e8   : > { %v472_v57 = vpop.trf.xlu0  ;;  %v503_v58 = vpop.trf.xlu1 }
 0x1e9   : > { %1740 = vmatmul.mubr.msk.f32.gmra.mxu0 %vm315_vm0, %v472_v57 }
 0x1ec   : > { %v473_v59 = vpop.trf.xlu0  ;;  %v504_v60 = vpop.trf.xlu1 }
 0x1ed   : > { %1742 = vmatprep.mubr.msk.f32.mxu0 %vm315_vm0, %v473_v59 }
 0x1f0   : > { %v474_v61 = vpop.trf.xlu0  ;;  %v505_v62 = vpop.trf.xlu1 }
 0x1f1   : > { %1743 = vmatmul.mubr.msk.f32.gmra.mxu0 %vm315_vm0, %v474_v61  ;;  %1766 = vmatprep.mubr.msk.f32.mxu1 %vm315_vm0, %v505_v62 }
 0x1f4   : > { %v475_v63 = vpop.trf.xlu0  ;;  %v506_v0 = vpop.trf.xlu1 }
 0x1f5   : > { %1745 = vmatprep.mubr.msk.f32.mxu0 %vm315_vm0, %v475_v63  ;;  %1767 = vmatmul.mubr.msk.f32.vlgmr.msra.gmra.mxu1 %vm315_vm0, %v506_v0 }
 0x1f8   : > { %v476_v1 = vpop.trf.xlu0  ;;  %v507_v2 = vpop.trf.xlu1 }
 0x1f9   : > { %1746 = vmatmul.mubr.msk.f32.gmra.mxu0 %vm315_vm0, %v476_v1  ;;  %1769 = vmatprep.mubr.msk.f32.mxu1 %vm315_vm0, %v507_v2 }
 0x1fa   : > { %1748 = vmatprep.mubr.msk.f32.mxu0 %vm315_vm0, %v493_v38  ;;  %v1153_v38 = vshrl.u32 %v1152_v36, 7 }
 0x1fc   : > { %v508_v3 = vpop.trf.xlu1  ;;  %v525_v4 = vpop.trf.xlu0  ;;  %v1154_v39 = vadd.s32 8, %v1153_v38 }
 0x1fd   : > { %1749 = vmatmul.mubr.msk.f32.gmra.mxu0 %vm315_vm0, %v494_v40  ;;  %1770 = vmatmul.mubr.msk.f32.gmra.mxu1 %vm315_vm0, %v508_v3  ;;  %v2408_v40 = vand.u32 127, %v1152_v36 }
 0x1fe   : > { %1751 = vmatprep.mubr.msk.f32.mxu0 %vm315_vm0, %v495_v42  ;;  %1772 = vmatprep.mubr.msk.f32.mxu1 %vm315_vm0, %v525_v4  ;;  %vm1172_vm1 = vcmp.lt.s32.totalorder %v1154_v39, 10 }
 0x1ff   : > { %vm1187_vm2 = vcmp.lt.s32.totalorder %v2408_v40, 10 }
 0x200   : > { %v526_v5 = vpop.trf.xlu0  ;;  %v557_v6 = vpop.trf.xlu1  ;;  %vm2413_vm3 = vmand %vm1172_vm1, %vm1187_vm2 }
 0x201   : > { %1752 = vmatmul.mubr.msk.f32.gmra.mxu0 %vm315_vm0, %v496_v44  ;;  %1773 = vmatmul.mubr.msk.f32.gmra.mxu1 %vm315_vm0, %v526_v5 }
 0x202   : > { %1754 = vmatprep.mubr.msk.f32.mxu0 %vm315_vm0, %v497_v46 }
 0x204   : > { %v527_v7 = vpop.trf.xlu0  ;;  %v558_v8 = vpop.trf.xlu1 }
 0x205   : > { %1755 = vmatmul.mubr.msk.f32.gmra.mxu0 %vm315_vm0, %v498_v48  ;;  %1775 = vmatprep.mubr.msk.f32.mxu1 %vm315_vm0, %v527_v7 }
 0x206   : > { %1757 = vmatprep.mubr.msk.f32.mxu0 %vm315_vm0, %v499_v50 }
 0x208   : > { %v528_v9 = vpop.trf.xlu0  ;;  %v559_v10 = vpop.trf.xlu1 }
 0x209   : > { %1758 = vmatmul.mubr.msk.f32.gmra.mxu0 %vm315_vm0, %v500_v52  ;;  %1776 = vmatmul.mubr.msk.f32.gmra.mxu1 %vm315_vm0, %v528_v9 }
 0x20a   : > { %1760 = vmatprep.mubr.msk.f32.mxu0 %vm315_vm0, %v501_v54 }
 0x20c   : > { %v529_v11 = vpop.trf.xlu0  ;;  %v560_v12 = vpop.trf.xlu1 }
 0x20d   : > { %1761 = vmatmul.mubr.msk.f32.gmra.mxu0 %vm315_vm0, %v502_v56  ;;  %1778 = vmatprep.mubr.msk.f32.mxu1 %vm315_vm0, %v529_v11 }
 0x20e   : > { %1763 = vmatprep.mubr.msk.f32.mxu0 %vm315_vm0, %v503_v58 }
 0x210   : > { %v530_v13 = vpop.trf.xlu0  ;;  %v561_v15 = vpop.trf.xlu1 }
 0x211   : > { %1764 = vmatmul.mubr.msk.f32.gmra.mxu0 %vm315_vm0, %v504_v60  ;;  %1779 = vmatmul.mubr.msk.f32.gmra.mxu1 %vm315_vm0, %v530_v13 }
 0x214   : > { %v531_v14 = vpop.trf.xlu0  ;;  %v562_v17 = vpop.trf.xlu1 }
 0x215   : > { %1781 = vmatprep.mubr.msk.f32.mxu1 %vm315_vm0, %v531_v14 }
 0x218   : > { %v532_v16 = vpop.trf.xlu0  ;;  %v563_v20 = vpop.trf.xlu1 }
 0x219   : > { %1782 = vmatmul.mubr.msk.f32.gmra.mxu1 %vm315_vm0, %v532_v16 }
 0x21c   : > { %v533_v18 = vpop.trf.xlu0  ;;  %v564_v22 = vpop.trf.xlu1 }
 0x21d   : > { %1784 = vmatprep.mubr.msk.f32.mxu1 %vm315_vm0, %v533_v18 }
 0x220   : > { %v534_v19 = vpop.trf.xlu0  ;;  %v565_v25 = vpop.trf.xlu1 }
 0x221   : > { %1785 = vmatmul.mubr.msk.f32.gmra.mxu1 %vm315_vm0, %v534_v19 }
 0x224   : > { %v535_v21 = vpop.trf.xlu0  ;;  %v566_v27 = vpop.trf.xlu1 }
 0x225   : > { %1787 = vmatprep.mubr.msk.f32.mxu1 %vm315_vm0, %v535_v21 }
 0x228   : > { %v536_v23 = vpop.trf.xlu0  ;;  %v567_v30 = vpop.trf.xlu1 }
 0x229   : > { %1788 = vmatmul.mubr.msk.f32.gmra.mxu1 %vm315_vm0, %v536_v23 }
 0x22c   : > { %v537_v24 = vpop.trf.xlu0  ;;  %v568_v31 = vpop.trf.xlu1 }
 0x22d   : > { %1790 = vmatprep.mubr.msk.f32.mxu1 %vm315_vm0, %v537_v24 }
 0x230   : > { %v538_v26 = vpop.trf.xlu0  ;;  %v569_v32 = vpop.trf.xlu1 }
 0x231   : > { %1791 = vmatmul.mubr.msk.f32.gmra.mxu1 %vm315_vm0, %v538_v26 }
 0x234   : > { %v539_v28 = vpop.trf.xlu0  ;;  %v570_v33 = vpop.trf.xlu1 }
 0x235   : > { %1793 = vmatprep.mubr.msk.f32.mxu1 %vm315_vm0, %v539_v28 }
 0x238   : > { %v540_v29 = vpop.trf.xlu0  ;;  %v571_v34 = vpop.trf.xlu1 }
 0x239   : > { %1794 = vmatmul.mubr.msk.f32.gmra.mxu1 %vm315_vm0, %v540_v29 }
 0x23a   : > { %1796 = vmatprep.mubr.msk.f32.mxu1 %vm315_vm0, %v557_v6 }
 0x23c   : > { %v572_v35 = vpop.trf.xlu1 }
 0x23d   : > { %1797 = vmatmul.mubr.msk.f32.gmra.mxu1 %vm315_vm0, %v558_v8 }
 0x23e   : > { %1799 = vmatprep.mubr.msk.f32.mxu1 %vm315_vm0, %v559_v10 }
 0x241   : > { %1800 = vmatmul.mubr.msk.f32.gmra.mxu1 %vm315_vm0, %v560_v12 }
 0x242   : > { %1802 = vmatprep.mubr.msk.f32.mxu1 %vm315_vm0, %v561_v15 }
 0x245   : > { %1803 = vmatmul.mubr.msk.f32.gmra.mxu1 %vm315_vm0, %v562_v17 }
 0x246   : > { %1805 = vmatprep.mubr.msk.f32.mxu1 %vm315_vm0, %v563_v20 }
 0x249   : > { %1806 = vmatmul.mubr.msk.f32.gmra.mxu1 %vm315_vm0, %v564_v22 }
 0x24a   : > { %1808 = vmatprep.mubr.msk.f32.mxu1 %vm315_vm0, %v565_v25 }
 0x24d   : > { %1809 = vmatmul.mubr.msk.f32.gmra.mxu1 %vm315_vm0, %v566_v27 }
 0x24e   : > { %1811 = vmatprep.mubr.msk.f32.mxu1 %vm315_vm0, %v567_v30 }
 0x251   : > { %1812 = vmatmul.mubr.msk.f32.gmra.mxu1 %vm315_vm0, %v568_v31 }
 0x252   : > { %1814 = vmatprep.mubr.msk.f32.mxu1 %vm315_vm0, %v569_v32 }
 0x255   : > { %1815 = vmatmul.mubr.msk.f32.gmra.mxu1 %vm315_vm0, %v570_v33 }
 0x256   : > { %1817 = vmatprep.mubr.msk.f32.mxu1 %vm315_vm0, %v571_v34 }
 0x259   : > { %1818 = vmatmul.mubr.msk.f32.gmra.mxu1 %vm315_vm0, %v572_v35 }
 0x281   : > { %v1726_v37 = vpop.f32.mrf.mxu0 }
 0x282   : > { %v1205_v44 = vmul.f32 %v1726_v37, %v1726_v37 }
 0x283   : > { %v833_v41 = vpop.f32.mrf.mxu0 }
 0x284   : > { %v1204_v43 = vmul.f32 %v833_v41, %v833_v41  ;;  %v1269_v50 = vsel %vm2413_vm3, 0.0, %v1205_v44 }
 0x286   : > { %v1268_v47 = vsel %vm1187_vm2, 0.0, %v1204_v43 }
 0x287   : > { %v1332_v51 = vadd.f32 %v1269_v50, %v1268_v47 }
 0x289   : > { %v1729_v42 = vpop.f32.mrf.mxu0 }
 0x28a   : > { %v1207_v55 = vmul.f32 %v1729_v42, %v1729_v42 }
 0x28b   : > { %v843_v45 = vpop.f32.mrf.mxu0 }
 0x28c   : > { %v1206_v49 = vmul.f32 %v843_v45, %v843_v45 }
 0x28e   : > { %v1333_v53 = vadd.f32 %v1332_v51, %v1206_v49 }
 0x290   : > { %v1334_v57 = vadd.f32 %v1333_v53, %v1207_v55 }
 0x291   : > { %v1732_v48 = vpop.f32.mrf.mxu0 }
 0x292   : > { %v1209_v61 = vmul.f32 %v1732_v48, %v1732_v48 }
 0x293   : > { %v853_v52 = vpop.f32.mrf.mxu0 }
 0x294   : > { %v1208_v56 = vmul.f32 %v853_v52, %v853_v52 }
 0x296   : > { %v1335_v59 = vadd.f32 %v1334_v57, %v1208_v56 }
 0x298   : > { %v1336_v63 = vadd.f32 %v1335_v59, %v1209_v61 }
 0x299   : > { %v1735_v54 = vpop.f32.mrf.mxu0 }
 0x29a   : > { %v1211_v2 = vmul.f32 %v1735_v54, %v1735_v54 }
 0x29b   : > { %v863_v58 = vpop.f32.mrf.mxu0 }
 0x29c   : > { %v1210_v62 = vmul.f32 %v863_v58, %v863_v58 }
 0x29e   : > { %v1337_v1 = vadd.f32 %v1336_v63, %v1210_v62 }
 0x2a0   : > { %v1338_v5 = vadd.f32 %v1337_v1, %v1211_v2 }
 0x2a1   : > { %v1738_v60 = vpop.f32.mrf.mxu0 }
 0x2a2   : > { %v1213_v8 = vmul.f32 %v1738_v60, %v1738_v60 }
 0x2a3   : > { %v873_v0 = vpop.f32.mrf.mxu0 }
 0x2a4   : > { %v1212_v3 = vmul.f32 %v873_v0, %v873_v0 }
 0x2a6   : > { %v1339_v7 = vadd.f32 %v1338_v5, %v1212_v3 }
 0x2a8   : > { %v1340_v10 = vadd.f32 %v1339_v7, %v1213_v8 }
 0x2a9   : > { %v1741_v4 = vpop.f32.mrf.mxu0 }
 0x2aa   : > { %v1215_v14 = vmul.f32 %v1741_v4, %v1741_v4 }
 0x2ab   : > { %v883_v6 = vpop.f32.mrf.mxu0 }
 0x2ac   : > { %v1214_v9 = vmul.f32 %v883_v6, %v883_v6 }
 0x2ae   : > { %v1341_v12 = vadd.f32 %v1340_v10, %v1214_v9 }
 0x2b0   : > { %v1342_v16 = vadd.f32 %v1341_v12, %v1215_v14 }
 0x2b1   : > { %v1744_v11 = vpop.f32.mrf.mxu0 }
 0x2b2   : > { %v1217_v19 = vmul.f32 %v1744_v11, %v1744_v11 }
 0x2b3   : > { %v893_v13 = vpop.f32.mrf.mxu0 }
 0x2b4   : > { %v1216_v15 = vmul.f32 %v893_v13, %v893_v13 }
 0x2b5   : > { %v1768_v25 = vpop.f32.mrf.mxu1 }
 0x2b6   : > { %v1343_v17 = vadd.f32 %v1342_v16, %v1216_v15  ;;  %v1233_v12 = vmul.f32 %v1768_v25, %v1768_v25 }
 0x2b7   : > { %v973_v32 = vpop.f32.mrf.mxu1 }
 0x2b8   : > { %v1344_v22 = vadd.f32 %v1343_v17, %v1217_v19  ;;  %v1232_v9 = vmul.f32 %v973_v32, %v973_v32 }
 0x2b9   : > { %v1747_v18 = vpop.f32.mrf.mxu0 }
 0x2ba   : > { %v1219_v24 = vmul.f32 %v1747_v18, %v1747_v18 }
 0x2bb   : > { %v903_v20 = vpop.f32.mrf.mxu0 }
 0x2bc   : > { %v1218_v21 = vmul.f32 %v903_v20, %v903_v20 }
 0x2bd   : > { %v1750_v23 = vpop.f32.mrf.mxu0  ;;  %v1771_v41 = vpop.f32.mrf.mxu1 }
 0x2be   : > { %v1345_v26 = vadd.f32 %v1344_v22, %v1218_v21  ;;  %v1221_v29 = vmul.f32 %v1750_v23, %v1750_v23  ;;  %v1235_v18 = vmul.f32 %v1771_v41, %v1771_v41 }
 0x2bf   : > { %v913_v27 = vpop.f32.mrf.mxu0  ;;  %v983_v49 = vpop.f32.mrf.mxu1 }
 0x2c0   : > { %v1346_v28 = vadd.f32 %v1345_v26, %v1219_v24  ;;  %v1220_v30 = vmul.f32 %v913_v27, %v913_v27  ;;  %v1285_v36 = vsel %vm2413_vm3, 0.0, %v1221_v29  ;;  %v1234_v14 = vmul.f32 %v983_v49, %v983_v49 }
 0x2c1   : > { %v1753_v31 = vpop.f32.mrf.mxu0  ;;  %v1774_v56 = vpop.f32.mrf.mxu1 }
 0x2c2   : > { %v1284_v33 = vsel %vm1187_vm2, 0.0, %v1220_v30  ;;  %v1223_v42 = vmul.f32 %v1753_v31, %v1753_v31  ;;  %v1237_v20 = vmul.f32 %v1774_v56, %v1774_v56 }
 0x2c3   : > { %v1347_v34 = vadd.f32 %v1346_v28, %v1284_v33  ;;  %v923_v35 = vpop.f32.mrf.mxu0  ;;  %v993_v63 = vpop.f32.mrf.mxu1 }
 0x2c4   : > { %v1222_v37 = vmul.f32 %v923_v35, %v923_v35  ;;  %v1236_v16 = vmul.f32 %v993_v63, %v993_v63  ;;  %v1301_v26 = vsel %vm2413_vm3, 0.0, %v1237_v20 }
 0x2c5   : > { %v1348_v38 = vadd.f32 %v1347_v34, %v1285_v36  ;;  %v1756_v39 = vpop.f32.mrf.mxu0 }
 0x2c6   : > { %v1225_v50 = vmul.f32 %v1756_v39, %v1756_v39  ;;  %v1300_v23 = vsel %vm1187_vm2, 0.0, %v1236_v16 }
 0x2c7   : > { %v1349_v43 = vadd.f32 %v1348_v38, %v1222_v37  ;;  %v933_v44 = vpop.f32.mrf.mxu0 }
 0x2c8   : > { %v1224_v45 = vmul.f32 %v933_v44, %v933_v44 }
 0x2c9   : > { %v1350_v47 = vadd.f32 %v1349_v43, %v1223_v42  ;;  %v1759_v48 = vpop.f32.mrf.mxu0  ;;  %v1777_v3 = vpop.f32.mrf.mxu1 }
 0x2ca   : > { %v1227_v57 = vmul.f32 %v1759_v48, %v1759_v48  ;;  %v1239_v30 = vmul.f32 %v1777_v3, %v1777_v3 }
 0x2cb   : > { %v1351_v51 = vadd.f32 %v1350_v47, %v1224_v45  ;;  %v943_v52 = vpop.f32.mrf.mxu0  ;;  %v1003_v8 = vpop.f32.mrf.mxu1 }
 0x2cc   : > { %v1226_v53 = vmul.f32 %v943_v52, %v943_v52  ;;  %v1238_v28 = vmul.f32 %v1003_v8, %v1003_v8 }
 0x2cd   : > { %v1352_v54 = vadd.f32 %v1351_v51, %v1225_v50  ;;  %v1762_v55 = vpop.f32.mrf.mxu0 }
 0x2ce   : > { %v1229_v0 = vmul.f32 %v1762_v55, %v1762_v55 }
 0x2cf   : > { %v1353_v58 = vadd.f32 %v1352_v54, %v1226_v53  ;;  %v953_v59 = vpop.f32.mrf.mxu0 }
 0x2d0   : > { %v1228_v60 = vmul.f32 %v953_v59, %v953_v59 }
 0x2d1   : > { %v1354_v61 = vadd.f32 %v1353_v58, %v1227_v57  ;;  %v1765_v62 = vpop.f32.mrf.mxu0  ;;  %v1780_v11 = vpop.f32.mrf.mxu1 }
 0x2d2   : > { %v1231_v6 = vmul.f32 %v1765_v62, %v1765_v62  ;;  %v1241_v35 = vmul.f32 %v1780_v11, %v1780_v11 }
 0x2d3   : > { %v1355_v1 = vadd.f32 %v1354_v61, %v1228_v60  ;;  %v963_v2 = vpop.f32.mrf.mxu0  ;;  %v1013_v17 = vpop.f32.mrf.mxu1 }
 0x2d4   : > { %v1230_v4 = vmul.f32 %v963_v2, %v963_v2  ;;  %v1240_v32 = vmul.f32 %v1013_v17, %v1013_v17 }
 0x2d5   : > { %v1356_v5 = vadd.f32 %v1355_v1, %v1229_v0 }
 0x2d7   : > { %v1357_v7 = vadd.f32 %v1356_v5, %v1230_v4 }
 0x2d9   : > { %v1358_v10 = vadd.f32 %v1357_v7, %v1231_v6  ;;  %v1783_v21 = vpop.f32.mrf.mxu1 }
 0x2da   : > { %v1243_v41 = vmul.f32 %v1783_v21, %v1783_v21 }
 0x2db   : > { %v1359_v13 = vadd.f32 %v1358_v10, %v1232_v9  ;;  %v1023_v27 = vpop.f32.mrf.mxu1 }
 0x2dc   : > { %v1242_v38 = vmul.f32 %v1023_v27, %v1023_v27 }
 0x2dd   : > { %v1360_v15 = vadd.f32 %v1359_v13, %v1233_v12 }
 0x2df   : > { %v1361_v19 = vadd.f32 %v1360_v15, %v1234_v14 }
 0x2e1   : > { %v1362_v22 = vadd.f32 %v1361_v19, %v1235_v18  ;;  %v1786_v29 = vpop.f32.mrf.mxu1 }
 0x2e2   : > { %v1245_v48 = vmul.f32 %v1786_v29, %v1786_v29 }
 0x2e3   : > { %v1363_v24 = vadd.f32 %v1362_v22, %v1300_v23  ;;  %v1033_v34 = vpop.f32.mrf.mxu1 }
 0x2e4   : > { %v1244_v44 = vmul.f32 %v1033_v34, %v1033_v34 }
 0x2e5   : > { %v1364_v25 = vadd.f32 %v1363_v24, %v1301_v26 }
 0x2e7   : > { %v1365_v31 = vadd.f32 %v1364_v25, %v1238_v28 }
 0x2e9   : > { %v1366_v33 = vadd.f32 %v1365_v31, %v1239_v30  ;;  %v1789_v37 = vpop.f32.mrf.mxu1 }
 0x2ea   : > { %v1247_v53 = vmul.f32 %v1789_v37, %v1789_v37 }
 0x2eb   : > { %v1367_v36 = vadd.f32 %v1366_v33, %v1240_v32  ;;  %v1043_v43 = vpop.f32.mrf.mxu1 }
 0x2ec   : > { %v1246_v50 = vmul.f32 %v1043_v43, %v1043_v43 }
 0x2ed   : > { %v1368_v39 = vadd.f32 %v1367_v36, %v1241_v35 }
 0x2ef   : > { %v1369_v42 = vadd.f32 %v1368_v39, %v1242_v38 }
 0x2f1   : > { %v1370_v45 = vadd.f32 %v1369_v42, %v1243_v41  ;;  %v1792_v47 = vpop.f32.mrf.mxu1 }
 0x2f2   : > { %v1249_v58 = vmul.f32 %v1792_v47, %v1792_v47 }
 0x2f3   : > { %v1371_v49 = vadd.f32 %v1370_v45, %v1244_v44  ;;  %v1053_v52 = vpop.f32.mrf.mxu1 }
 0x2f4   : > { %v1248_v55 = vmul.f32 %v1053_v52, %v1053_v52 }
 0x2f5   : > { %v1372_v51 = vadd.f32 %v1371_v49, %v1245_v48 }
 0x2f7   : > { %v1373_v54 = vadd.f32 %v1372_v51, %v1246_v50 }
 0x2f9   : > { %v1374_v56 = vadd.f32 %v1373_v54, %v1247_v53  ;;  %v1795_v57 = vpop.f32.mrf.mxu1 }
 0x2fa   : > { %v1251_v0 = vmul.f32 %v1795_v57, %v1795_v57 }
 0x2fb   : > { %v1375_v59 = vadd.f32 %v1374_v56, %v1248_v55  ;;  %v1063_v60 = vpop.f32.mrf.mxu1 }
 0x2fc   : > { %v1250_v61 = vmul.f32 %v1063_v60, %v1063_v60 }
 0x2fd   : > { %v1376_v62 = vadd.f32 %v1375_v59, %v1249_v58  ;;  %v1798_v63 = vpop.f32.mrf.mxu1 }
 0x2fe   : > { %v1253_v3 = vmul.f32 %v1798_v63, %v1798_v63 }
 0x2ff   : > { %v1377_v1 = vadd.f32 %v1376_v62, %v1250_v61  ;;  %v1073_v2 = vpop.f32.mrf.mxu1 }
 0x300   : > { %v1252_v4 = vmul.f32 %v1073_v2, %v1073_v2  ;;  %v1317_v10 = vsel %vm2413_vm3, 0.0, %v1253_v3 }
 0x301   : > { %v1378_v5 = vadd.f32 %v1377_v1, %v1251_v0  ;;  %v1801_v6 = vpop.f32.mrf.mxu1 }
 0x302   : > { %v1316_v7 = vsel %vm1187_vm2, 0.0, %v1252_v4  ;;  %v1255_v14 = vmul.f32 %v1801_v6, %v1801_v6 }
 0x303   : > { %v1379_v8 = vadd.f32 %v1378_v5, %v1316_v7  ;;  %v1083_v9 = vpop.f32.mrf.mxu1 }
 0x304   : > { %v1254_v11 = vmul.f32 %v1083_v9, %v1083_v9 }
 0x305   : > { %v1380_v12 = vadd.f32 %v1379_v8, %v1317_v10  ;;  %v1804_v13 = vpop.f32.mrf.mxu1 }
 0x306   : > { %v1257_v20 = vmul.f32 %v1804_v13, %v1804_v13 }
 0x307   : > { %v1381_v15 = vadd.f32 %v1380_v12, %v1254_v11  ;;  %v1093_v16 = vpop.f32.mrf.mxu1 }
 0x308   : > { %v1256_v17 = vmul.f32 %v1093_v16, %v1093_v16 }
 0x309   : > { %v1382_v18 = vadd.f32 %v1381_v15, %v1255_v14  ;;  %v1807_v19 = vpop.f32.mrf.mxu1 }
 0x30a   : > { %v1259_v26 = vmul.f32 %v1807_v19, %v1807_v19 }
 0x30b   : > { %v1383_v21 = vadd.f32 %v1382_v18, %v1256_v17  ;;  %v1103_v22 = vpop.f32.mrf.mxu1 }
 0x30c   : > { %v1258_v23 = vmul.f32 %v1103_v22, %v1103_v22 }
 0x30d   : > { %v1384_v40 = vadd.f32 %v1383_v21, %v1257_v20  ;;  %v1810_v24 = vpop.f32.mrf.mxu1 }
 0x30e   : > { %v1261_v30 = vmul.f32 %v1810_v24, %v1810_v24 }
 0x30f   : > { %v1385_v27 = vadd.f32 %v1384_v40, %v1258_v23  ;;  %v1113_v28 = vpop.f32.mrf.mxu1 }
 0x310   : > { %v1260_v46 = vmul.f32 %v1113_v28, %v1113_v28 }
 0x311   : > { %v1386_v25 = vadd.f32 %v1385_v27, %v1259_v26  ;;  %v1813_v29 = vpop.f32.mrf.mxu1 }
 0x312   : > { %v1263_v36 = vmul.f32 %v1813_v29, %v1813_v29 }
 0x313   : > { %v1387_v31 = vadd.f32 %v1386_v25, %v1260_v46  ;;  %v1123_v32 = vpop.f32.mrf.mxu1 }
 0x314   : > { %v1262_v33 = vmul.f32 %v1123_v32, %v1123_v32 }
 0x315   : > { %v1388_v34 = vadd.f32 %v1387_v31, %v1261_v30  ;;  %v1816_v35 = vpop.f32.mrf.mxu1 }
 0x316   : > { %v1265_v43 = vmul.f32 %v1816_v35, %v1816_v35 }
 0x317   : > { %v1389_v37 = vadd.f32 %v1388_v34, %v1262_v33  ;;  %v1133_v38 = vpop.f32.mrf.mxu1 }
 0x318   : > { %v1264_v39 = vmul.f32 %v1133_v38, %v1133_v38 }
 0x319   : > { %v1390_v41 = vadd.f32 %v1389_v37, %v1263_v36  ;;  %v1819_v42 = vpop.f32.mrf.mxu1 }
 0x31a   : > { %v1267_v49 = vmul.f32 %v1819_v42, %v1819_v42 }
 0x31b   : > { %v1391_v44 = vadd.f32 %v1390_v41, %v1264_v39  ;;  %v1143_v45 = vpop.f32.mrf.mxu1 }
 0x31c   : > { %v1266_v47 = vmul.f32 %v1143_v45, %v1143_v45 }
 0x31d   : > { %v1392_v48 = vadd.f32 %v1391_v44, %v1265_v43 }
 0x31f   : > { %v1393_v50 = vadd.f32 %v1392_v48, %v1266_v47 }
 0x321   : > { %v1394_v51 = vadd.f32 %v1393_v50, %v1267_v49 }
 0x323   : > { %v1395_v52 = vrot.slane %v1394_v51, 4 }
 0x325   : > { %v1396_v53 = vadd.f32 %v1395_v52, %v1394_v51 }
 0x327   : > { %v1397_v54 = vrot.slane %v1396_v53, 2 }
 0x329   : > { %v1398_v55 = vadd.f32 %v1397_v54, %v1396_v53 }
 0x32b   : > { %v1399_v56 = vrot.slane %v1398_v55, 1 }
 0x32d   : > { %v1400_v57 = vadd.f32 %v1399_v56, %v1398_v55 }
 0x32f   : > { %1402 = vst [vmem:[%s286_s30] sm:$0xff] %v1400_v57 }
 0x330   : > { %2020 = shalt.err (!%p2017_p4)
}
 0x331   : > { %s2021_s26 = scalar_lea.hbm %s1415_s13, 128  ;;  %s2025_s5 = scalar_lea.hbm %s2473_s4, 256 }
 0x332   : > { %p2022_p5 = scmp.ne.s32.totalorder %s1415_s13, %s2021_s26  ;;  %p2026_p2 = scmp.lt.s32.totalorder %s1415_s13, %s2473_s4 }
 0x333   : > { %p2027_p6 = scmp.lt.s32.totalorder %s2025_s5, %s2021_s26 }
 0x334   : > { %p2023_p7 = pnand %p2022_p5, %p2498_p10 }
 0x335   : > { %p2028_p12 = por %p2027_p6, %p2026_p2 }
 0x336   : > { %p2024_p8 = pneg %p2023_p7 }
 0x338   : > { %p2029_p0 = pnand %p2028_p12, %p2024_p8 }
 0x33a   : > { %2032 = shalt.err (!%p2029_p0)
}
 0x33b   : > { %1836 = dma.vmem_to_hbm [thread:$0]  (%p2498_p10), %s1418_s6, 128, %s1415_s13, %s1404_s29  }
 0x33c PF: > { %s1429_s12 = sand.u32 1, %s2071_s15   ;;  %p2499_p3 = scmp.ne.s32.totalorder %s2483_s22, 0 }
 0x33d   : > { %p2500_p11 = scmp.ge.s32.totalorder %s2083_s18, 2  ;;  %s1430_s21 = scalar_lea.sflag [#allocation4], %s1429_s12 }
 0x33f   : > { %p1853_p9 = pnand %p2500_p11, %p2499_p3 }
 0x341   : > { %p1854_p13 = pneg %p1853_p9 }
 0x343   : > { %2066 = dma.done.wait (%p1854_p13), %s1430_s21, 128  }
 0x344   : > { %2068 = vsyncadd (%p1854_p13), %s1430_s21, 4294967168  ;;  %p21_p1 = scmp.ge.s32.totalorder %s2195_s11, 4   ;;  %s2501_s15 = smov %s2075_s16 }
 0x345   : > { %s2502_s16 = smov %s2079_s17  ;;  %s2503_s17 = smov %s2211_s20 }
 0x346   : > { %s2504_s18 = smov %s2195_s11  ;;  %23 = sbr.rel (!%p21_p1) target bundleno = 10 (0xa), region = 102 }
 0x34b   :  { %1435 = vsyncpa [#allocation3], 1 }
 0x34c   :  { %1437 = vsyncpa [#allocation3 + $0x1], 1 }
 0x34d   :  { %1438 = vsyncpa [#allocation6], 1 }
 0x34e   :  { %1440 = vsyncpa [#allocation6 + $0x1], 1 }
 0x34f   :  { %1441 = vsyncpa [#allocation9], 1 }
 0x350   :  { %1442 = vsyncpa [#allocation4], 1 }
 0x351   :  { %1444 = vsyncpa [#allocation4 + $0x1], 1 }

</bundles_post_ra>
